<compile_context>
chip_gen: v6e
topology: v6e:2x2x1
jax: 0.10.0
libtpu: 0.0.40
codegen_flags: <defaults>
</compile_context>

<pallas_src>
import functools

import jax
import jax.numpy as jnp
from jax.experimental import pallas as pl
from jax.experimental.pallas import tpu as pltpu


_SMALL_K = 8  # kernel_size threshold between unrolled taps and doubling tree


def _window_sum(xp, kernel_size: int, n_out: int):
    """Sum of `kernel_size` consecutive rows of xp (axis 1) for n_out outputs.

    xp: (Bc, L_pad, Ct) register value in the input dtype.
    Returns float32 (Bc, n_out, Ct).
    """
    if kernel_size == 1:
        return xp[:, :n_out, :].astype(jnp.float32)

    if kernel_size <= _SMALL_K:
        # Small k: unrolled tap accumulation with per-tap upcast.
        acc = xp[:, 0:n_out, :].astype(jnp.float32)
        for t in range(1, kernel_size):
            acc = acc + xp[:, t:t + n_out, :].astype(jnp.float32)
        return acc

    # Large k (e.g. Autoformer's 25): pairwise doubling tree of windowed sums.
    #   w_m[i] = sum_{t<m} xp[i+t];  w_{2m}[i] = w_m[i] + w_m[i+m]
    # ~log2(k) + popcount(k) adds instead of k. Each level is trimmed to the
    # exact index range consumed later (length n_out + k - m) to bound vreg /
    # spill pressure.
    sums = {}
    n2 = n_out + kernel_size - 2
    sums[2] = (xp[:, 0:n2, :].astype(jnp.float32)
               + xp[:, 1:1 + n2, :].astype(jnp.float32))
    m = 2
    while 2 * m <= kernel_size:
        w = sums[m]
        n = n_out + kernel_size - 2 * m
        sums[2 * m] = w[:, :n, :] + w[:, m:m + n, :]
        m *= 2

    acc = None
    offset = 0
    rem = kernel_size
    bit = m
    while bit >= 1:
        if rem >= bit:
            if bit == 1:
                piece = xp[:, offset:offset + n_out, :].astype(jnp.float32)
            else:
                piece = sums[bit][:, offset:offset + n_out, :]
            acc = piece if acc is None else acc + piece
            offset += bit
            rem -= bit
        bit //= 2
    return acc


def _moving_avg_kernel(x_ref, o_ref, *, kernel_size: int, pad: int, n_out: int):
    """x_ref: (Bc, L, Ct) input tile; o_ref: (Bc, n_out, Ct) stride-1 window means."""
    Bc, L, Ct = x_ref.shape
    x = x_ref[...]

    if pad > 0:
        # Replicate-padded sequence built purely in registers (no VMEM scratch,
        # no store/reload round trip); kept in the input dtype.
        front = jnp.broadcast_to(x[:, 0:1, :], (Bc, pad, Ct))
        end = jnp.broadcast_to(x[:, L - 1:L, :], (Bc, pad, Ct))
        xp = jnp.concatenate([front, x, end], axis=1)
    else:
        xp = x

    acc = _window_sum(xp, kernel_size, n_out)
    o_ref[...] = (acc * (1.0 / kernel_size)).astype(o_ref.dtype)


def _vmem_budgets():
    """(physical VMEM capacity, per-step I/O+temps budget) for this generation."""
    try:
        cap = int(pltpu.get_tpu_info().vmem_capacity_bytes)
    except Exception:
        cap = 64 * 1024 * 1024  # conservative (v7x-sized) fallback
    # Leave half the chip for the compiler / other users; budget per pipeline
    # step so that double-buffered blocks + register temporaries stay inside.
    usable = min(cap // 2, 48 * 1024 * 1024)
    return cap, usable


def _choose_tiles(B, L, L_win, L_pad, C, itemsize, kernel_size):
    """Pick (batch_chunk, channel_tile, vmem_limit_bytes) or None for fallback."""
    cap, usable = _vmem_budgets()
    # Worst-case number of full-length f32 temporaries the compiler may have to
    # materialize in VMEM (padded value + tree levels + accumulator).
    temp_rows = 4 if kernel_size > _SMALL_K else 2

    def step_bytes(bc, ct):
        io = bc * ct * (L + L_win) * itemsize      # input block + output block
        temps = bc * ct * L_pad * 4 * temp_rows    # f32 register temporaries
        return 2 * io + temps                      # io is double-buffered

    # Channel tile: lane-dense multiples of 128 when C allows; otherwise whole C.
    if C % 128 == 0:
        ct_cands = [d for d in range(C, 127, -128) if C % d == 0]
    else:
        ct_cands = [C]
    Ct = None
    for ct in ct_cands:
        if step_bytes(1, ct) <= usable:
            Ct = ct
            break
    if Ct is None:
        # Even the minimal tile exceeds the per-step VMEM budget (very long L
        # or huge non-128-multiple C).
        # TODO(synk): add an L grid axis with a (kernel_size-1) halo instead.
        return None

    # Batch chunk: largest divisor of B that still fits the budget.
    Bc = 1
    for bc in range(B, 0, -1):
        if B % bc == 0 and step_bytes(bc, Ct) <= usable:
            Bc = bc
            break

    # Guarantee >= 2 grid steps on big problems so both v7x TensorCores get
    # work (cheap no-op on single-TC chips, skipped for tiny inputs).
    total_bytes = B * L * C * itemsize
    if (B // Bc) * (C // Ct) == 1 and total_bytes >= (1 << 20):
        if Ct % 256 == 0:
            Ct //= 2
        elif Bc % 2 == 0:
            Bc //= 2
        elif Bc > 1:
            for d in range(Bc // 2, 0, -1):
                if Bc % d == 0:
                    Bc = d
                    break

    vmem_limit = min(cap * 3 // 4,
                     max(step_bytes(Bc, Ct) + (8 << 20), 32 << 20))
    return Bc, Ct, vmem_limit


def _moving_avg_jax(x, kernel_size, stride):
    """Pure-JAX path (tiny inputs / shapes the Pallas tiler cannot fit)."""
    pad = (kernel_size - 1) // 2
    xp = jnp.concatenate(
        [jnp.repeat(x[:, 0:1, :], pad, axis=1), x,
         jnp.repeat(x[:, -1:, :], pad, axis=1)], axis=1).astype(jnp.float32)
    s = jax.lax.reduce_window(
        xp, 0.0, jax.lax.add,
        window_dimensions=(1, kernel_size, 1),
        window_strides=(1, stride, 1),
        padding="VALID")
    return (s * (1.0 / kernel_size)).astype(x.dtype)


def moving_avg(x: jax.Array, kernel_size: int, stride: int, *,
               min_pallas_bytes: int = 16 * 1024) -> jax.Array:
    """Moving average block. x: [B, L, C] -> [B, L_out, C].

    Matches torch: pad = (kernel_size-1)//2 replicated copies of the first/last
    timestep on both ends, then AvgPool1d(kernel_size, stride, padding=0).
    """
    assert kernel_size >= 1 and stride >= 1
    B, L, C = x.shape
    pad = (kernel_size - 1) // 2
    L_pad = L + 2 * pad
    assert L_pad >= kernel_size, "sequence too short for kernel_size"
    L_out = (L_pad - kernel_size) // stride + 1
    L_win = L_pad - kernel_size + 1  # stride-1 window count (computed in-kernel)
    itemsize = jnp.dtype(x.dtype).itemsize

    # Tiny inputs are dominated by kernel-invoke / DMA-setup overhead.
    if B * L * C * itemsize < min_pallas_bytes:
        return _moving_avg_jax(x, kernel_size, stride)

    tiles = _choose_tiles(B, L, L_win, L_pad, C, itemsize, kernel_size)
    if tiles is None:
        # TODO(synk): L halo tiling would let these shapes use the Pallas path.
        return _moving_avg_jax(x, kernel_size, stride)
    Bc, Ct, vmem_limit = tiles

    kernel = functools.partial(
        _moving_avg_kernel, kernel_size=kernel_size, pad=pad, n_out=L_win)

    out_win = pl.pallas_call(
        kernel,
        out_shape=jax.ShapeDtypeStruct((B, L_win, C), x.dtype),
        grid_spec=pltpu.PrefetchScalarGridSpec(
            num_scalar_prefetch=0,
            grid=(B // Bc, C // Ct),
            in_specs=[pl.BlockSpec((Bc, L, Ct), lambda b, c: (b, 0, c))],
            out_specs=pl.BlockSpec((Bc, L_win, Ct), lambda b, c: (b, 0, c)),
        ),
        compiler_params=pltpu.CompilerParams(
            dimension_semantics=("parallel", "parallel"),
            vmem_limit_bytes=vmem_limit,
        ),
    )(x)

    if stride == 1:
        return out_win
    # stride > 1: downsample the contiguous stride-1 result (rare path).
    return out_win[:, : (L_out - 1) * stride + 1 : stride, :]


def _reference_moving_avg(x: jax.Array, kernel_size: int, stride: int) -> jax.Array:
    """Pure-JAX reference mirroring the torch semantics (loop over windows)."""
    pad = (kernel_size - 1) // 2
    front = jnp.repeat(x[:, 0:1, :], pad, axis=1)
    end = jnp.repeat(x[:, -1:, :], pad, axis=1)
    xp = jnp.concatenate([front, x, end], axis=1)
    L_pad = xp.shape[1]
    L_out = (L_pad - kernel_size) // stride + 1
    outs = []
    for i in range(L_out):
        outs.append(jnp.mean(xp[:, i * stride:i * stride + kernel_size, :], axis=1))
    return jnp.stack(outs, axis=1)


if __name__ == "__main__":
    key = jax.random.PRNGKey(0)
    k1, k2, k3 = jax.random.split(key, 3)

    # Primary shape: [Batch, Length, Channel] = [2, 16, 32]
    x_small = jax.random.normal(k1, (2, 16, 32), dtype=jnp.float32)
    # Lane-dense variant (C multiple of 128)
    x_wide = jax.random.normal(k2, (2, 32, 256), dtype=jnp.float32)
    # bf16 input (per-tap upcast path)
    x_bf16 = jax.random.normal(k3, (2, 24, 128), dtype=jnp.float32).astype(jnp.bfloat16)

    # (input, kernel_size, stride, min_pallas_bytes override) -- override=0
    # forces the Pallas path even for tiny test shapes; None = default dispatch.
    cases = [
        (x_small, 25, 1, 0),    # Autoformer-style large kernel -> doubling tree
        (x_small, 5, 1, 0),     # small kernel -> unrolled tap path
        (x_small, 4, 2, 0),     # stride > 1 path
        (x_small, 1, 1, 0),     # degenerate k=1
        (x_wide, 25, 1, 0),     # lane-dense channel tiles
        (x_bf16, 7, 1, 0),      # bf16 input, f32 accumulation
        (x_small, 25, 1, None), # default dispatch: tiny -> pure-JAX fallback
    ]
    for xi, ks, st, minb in cases:
        kwargs = {} if minb is None else {"min_pallas_bytes": minb}
        out = jax.block_until_ready(moving_avg(xi, ks, st, **kwargs))
        ref = _reference_moving_avg(xi.astype(jnp.float32), ks, st)
        assert out.shape == ref.shape, (ks, st, out.shape, ref.shape)
        tol = 2e-2 if xi.dtype == jnp.bfloat16 else 1e-5
        assert jnp.allclose(out.astype(jnp.float32), ref, atol=tol, rtol=tol), \
            f"mismatch k={ks} s={st} dtype={xi.dtype}"

    print("KERNEL_OK")
</pallas_src>

<mosaic_0001>
module attributes {stable_mosaic.version = 11 : i64} {
  func.func @_moving_avg_kernel(%arg0: i32, %arg1: i32, %arg2: memref<2x16x32xf32, #tpu.memory_space<vmem>>, %arg3: memref<2x16x32xf32, #tpu.memory_space<vmem>>) attributes {dimension_semantics = [#tpu.dimension_semantics<parallel>, #tpu.dimension_semantics<parallel>], iteration_bounds = array<i64: 1, 1>, scalar_prefetch = 0 : i64, scratch_operands = 0 : i64, tpu.core_type = #tpu.core_type<tc>, window_params = [{transform_indices = @transform_0, window_bounds = array<i64: 2, 16, 32>}, {transform_indices = @transform_1, window_bounds = array<i64: 2, 16, 32>}]} {
    %c0 = arith.constant 0 : index
    %c0_0 = arith.constant 0 : index
    %c0_1 = arith.constant 0 : index
    %0 = vector.load %arg2[%c0, %c0_0, %c0_1] : memref<2x16x32xf32, #tpu.memory_space<vmem>>, vector<2x16x32xf32>
    %1 = vector.extract_strided_slice %0 {offsets = [0, 0, 0], sizes = [2, 1, 32], strides = [1, 1, 1]} : vector<2x16x32xf32> to vector<2x1x32xf32>
    %2 = vector.shape_cast %1 : vector<2x1x32xf32> to vector<2x1x32xf32>
    %3 = vector.broadcast %2 : vector<2x1x32xf32> to vector<2x12x32xf32>
    %4 = vector.extract_strided_slice %0 {offsets = [0, 15, 0], sizes = [2, 1, 32], strides = [1, 1, 1]} : vector<2x16x32xf32> to vector<2x1x32xf32>
    %5 = vector.shape_cast %4 : vector<2x1x32xf32> to vector<2x1x32xf32>
    %6 = vector.broadcast %5 : vector<2x1x32xf32> to vector<2x12x32xf32>
    %7 = tpu.concatenate %3, %0, %6 in 1 : vector<2x12x32xf32>, vector<2x16x32xf32>, vector<2x12x32xf32> -> vector<2x40x32xf32>
    %8 = vector.extract_strided_slice %7 {offsets = [0, 0, 0], sizes = [2, 39, 32], strides = [1, 1, 1]} : vector<2x40x32xf32> to vector<2x39x32xf32>
    %9 = vector.extract_strided_slice %7 {offsets = [0, 1, 0], sizes = [2, 39, 32], strides = [1, 1, 1]} : vector<2x40x32xf32> to vector<2x39x32xf32>
    %10 = arith.addf %8, %9 : vector<2x39x32xf32>
    %11 = vector.extract_strided_slice %10 {offsets = [0, 0, 0], sizes = [2, 37, 32], strides = [1, 1, 1]} : vector<2x39x32xf32> to vector<2x37x32xf32>
    %12 = vector.extract_strided_slice %10 {offsets = [0, 2, 0], sizes = [2, 37, 32], strides = [1, 1, 1]} : vector<2x39x32xf32> to vector<2x37x32xf32>
    %13 = arith.addf %11, %12 : vector<2x37x32xf32>
    %14 = vector.extract_strided_slice %13 {offsets = [0, 0, 0], sizes = [2, 33, 32], strides = [1, 1, 1]} : vector<2x37x32xf32> to vector<2x33x32xf32>
    %15 = vector.extract_strided_slice %13 {offsets = [0, 4, 0], sizes = [2, 33, 32], strides = [1, 1, 1]} : vector<2x37x32xf32> to vector<2x33x32xf32>
    %16 = arith.addf %14, %15 : vector<2x33x32xf32>
    %17 = vector.extract_strided_slice %16 {offsets = [0, 0, 0], sizes = [2, 25, 32], strides = [1, 1, 1]} : vector<2x33x32xf32> to vector<2x25x32xf32>
    %18 = vector.extract_strided_slice %16 {offsets = [0, 8, 0], sizes = [2, 25, 32], strides = [1, 1, 1]} : vector<2x33x32xf32> to vector<2x25x32xf32>
    %19 = arith.addf %17, %18 : vector<2x25x32xf32>
    %20 = vector.extract_strided_slice %19 {offsets = [0, 0, 0], sizes = [2, 16, 32], strides = [1, 1, 1]} : vector<2x25x32xf32> to vector<2x16x32xf32>
    %21 = vector.extract_strided_slice %16 {offsets = [0, 16, 0], sizes = [2, 16, 32], strides = [1, 1, 1]} : vector<2x33x32xf32> to vector<2x16x32xf32>
    %22 = arith.addf %20, %21 : vector<2x16x32xf32>
    %23 = vector.extract_strided_slice %7 {offsets = [0, 24, 0], sizes = [2, 16, 32], strides = [1, 1, 1]} : vector<2x40x32xf32> to vector<2x16x32xf32>
    %24 = arith.addf %22, %23 : vector<2x16x32xf32>
    %cst = arith.constant 4.000000e-02 : f32
    %25 = vector.broadcast %cst : f32 to vector<2x16x32xf32>
    %26 = arith.mulf %24, %25 : vector<2x16x32xf32>
    %c0_2 = arith.constant 0 : index
    %c0_3 = arith.constant 0 : index
    %c0_4 = arith.constant 0 : index
    %27 = vector.load %arg3[%c0_2, %c0_3, %c0_4] : memref<2x16x32xf32, #tpu.memory_space<vmem>>, vector<2x16x32xf32>
    tpu.vector_store %arg3[%c0_2, %c0_3, %c0_4], %26 {strides = array<i32>} : memref<2x16x32xf32, #tpu.memory_space<vmem>>, vector<2x16x32xf32>,
    return
  }
  func.func @transform_0(%arg0: i32, %arg1: i32) -> (i32, i32, i32) {
    %c0_i32 = arith.constant 0 : i32
    %c0_i32_0 = arith.constant 0 : i32
    return %arg0, %c0_i32, %arg1 : i32, i32, i32
  }
  func.func @transform_1(%arg0: i32, %arg1: i32) -> (i32, i32, i32) {
    %c0_i32 = arith.constant 0 : i32
    %c0_i32_0 = arith.constant 0 : i32
    return %arg0, %c0_i32, %arg1 : i32, i32, i32
  }
}

</mosaic_0001>

<bundles_post_ra>
// kernel: tpu_custom_call.1
= control target key start
LH: loop header
LB: loop body
LE: loop exit
PB: predicated region body
PF: predicated region fallthrough
CT: control target
= control target key end

     0   :  { %6 = vsyncpa [#allocation3], 0  ;;  %s372_s0 = inlined_call_operand.hbm [shape: f32[2,16,32], index: 0, kind: input, shape index: {}]   ;;  %s373_s1 = inlined_call_operand.hbm [shape: f32[2,16,32], index: 1, kind: output, shape index: {}]  }
   0x1   :  { %7 = vsyncpa [#allocation4], 0  ;;  %s290_s6 = smov [#allocation2]  }
   0x2   :  { %s13_s7 = sshll.u32 %s290_s6, 4  ;;  %s14_s7 = int_to_ptr.vmem [resolvable:$true] %s13_s7 }
   0x3   :  { %s254_s8 = scalar_lea.vmem %s14_s7, 512  ;;  %p259_p1 = scmp.lt.s32.totalorder %s14_s7, %s14_s7 }
   0x4   :  { %p255_p0 = scmp.ne.s32.totalorder %s14_s7, %s254_s8  ;;  %p260_p2 = scmp.lt.s32.totalorder %s254_s8, %s254_s8 }
   0x6   :  { %p261_p3 = por %p260_p2, %p259_p1 }
   0x8   :  { %p262_p4 = pnand %p261_p3, %p255_p0 }
   0xa   :  { %265 = shalt.err (!%p262_p4)
}
   0xb   :  { %s291_s9 = smov 128   ;;  %s292_s10 = smov 8  }
   0xc   :  { %19 = dma.hbm_to_vmem [thread:$0]  %s372_s0, 512, %s14_s7, [#allocation3], %s291_s9, %s291_s9, %s292_s10  }
   0xd   :  { %286 = dma.done.wait [#allocation3], 512  }
   0xe   :  { %287 = vsyncadd [#allocation3], 4294966784  ;;  %v27_v0 = vlaneseq  ;;  %v23_v4 = vld [vmem:[#allocation2] sm:$0xff]  ;;  %v24_v5 = vld [vmem:[#allocation2 + $0x8] sm:$0xff]  ;;  %vm49_vm0 = vcmask 1043456   ;;  %vm72_vm1 = vcmask 1046528  }
   0xf   :  { %vm121_vm2 = vcmask 1045504   ;;  %v25_v6 = vld [vmem:[#allocation2 + $0x10] sm:$0xff]  ;;  %v50_v9 = vrot.slane %v23_v4, 4  ;;  %v51_v10 = vrot.slane %v24_v5, 4  ;;  %v26_v11 = vld [vmem:[#allocation2 + $0x18] sm:$0xff]  ;;  %vm220_vm3 = vcmask 261120  }
  0x10   :  { %v28_v1 = vshrl.u32 %v27_v0, 7  ;;  %v53_v14 = vrot.slane %v25_v6, 4  ;;  %v54_v15 = vrot.slane %v26_v11, 4  ;;  %s293_s0 = smov [#allocation5]  }
  0x11   :  { %v52_v16 = vsel %vm49_vm0, %v50_v9, %v51_v10  ;;  %s230_s13 = sshll.u32 %s293_s0, 4  ;;  %s231_s13 = int_to_ptr.vmem [resolvable:$true] %s230_s13 }
  0x12   :  { %v29_v2 = vsub.s32 0, %v28_v1  ;;  %v37_v3 = vsub.s32 7, %v28_v1  ;;  %v76_v21 = vrot.slane %v52_v16, 1  ;;  %v55_v24 = vsel %vm49_vm0, %v53_v14, %v54_v15  ;;  %s266_s14 = scalar_lea.vmem %s231_s13, 512  ;;  %p271_p6 = scmp.lt.s32.totalorder %s231_s13, %s231_s13 }
  0x13   :  { %v85_v38 = vrot.slane %v55_v24, 1  ;;  %p267_p5 = scmp.ne.s32.totalorder %s231_s13, %s266_s14  ;;  %p272_p7 = scmp.lt.s32.totalorder %s266_s14, %s266_s14 }
  0x14   :  { %v30_v7 = vrot.slane %v23_v4, %v29_v2  ;;  %v310_v8 = vrot.slane %v24_v5, %v37_v3  ;;  %v34_v12 = vrot.slane %v25_v6, %v29_v2  ;;  %v312_v13 = vrot.slane %v26_v11, %v37_v3 }
  0x15   :  { %p273_p8 = por %p272_p7, %p271_p6 }
  0x16   :  { %v64_v17 = vsel %vm49_vm0, %v30_v7, %v50_v9  ;;  %v318_v18 = vsel %vm49_vm0, %v51_v10, %v310_v8  ;;  %v73_v19 = vrot.slane %v30_v7, 1  ;;  %v80_v23 = vrot.slane %v310_v8, 1 }
  0x17   :  { %v74_v20 = vrot.slane %v64_v17, 1  ;;  %v78_v22 = vrot.slane %v318_v18, 1  ;;  %v65_v25 = vsel %vm49_vm0, %v34_v12, %v53_v14  ;;  %v326_v26 = vsel %vm49_vm0, %v54_v15, %v312_v13  ;;  %p274_p9 = pnand %p273_p8, %p267_p5 }
  0x18   :  { %v82_v27 = vrot.slane %v34_v12, 1  ;;  %v105_v36 = vadd.f32 %v80_v23, %v310_v8  ;;  %v83_v37 = vrot.slane %v65_v25, 1  ;;  %v87_v39 = vrot.slane %v326_v26, 1 }
  0x19   :  { %v75_v28 = vsel %vm72_vm1, %v73_v19, %v74_v20  ;;  %v77_v29 = vsel %vm72_vm1, %v74_v20, %v76_v21  ;;  %v79_v30 = vsel %vm72_vm1, %v76_v21, %v78_v22  ;;  %v81_v31 = vsel %vm72_vm1, %v78_v22, %v80_v23 }
  0x1a   :  { %v101_v32 = vadd.f32 %v75_v28, %v30_v7  ;;  %v102_v33 = vadd.f32 %v77_v29, %v64_v17  ;;  %v103_v34 = vadd.f32 %v79_v30, %v52_v16  ;;  %v104_v35 = vadd.f32 %v81_v31, %v318_v18 }
  0x1b   :  { %v129_v44 = vrot.slane %v105_v36, 2  ;;  %v84_v45 = vsel %vm72_vm1, %v82_v27, %v83_v37  ;;  %v86_v46 = vsel %vm72_vm1, %v83_v37, %v85_v38  ;;  %v88_v47 = vsel %vm72_vm1, %v85_v38, %v87_v39 }
  0x1c   :  { %v122_v40 = vrot.slane %v101_v32, 2  ;;  %v123_v41 = vrot.slane %v102_v33, 2  ;;  %v125_v42 = vrot.slane %v103_v34, 2  ;;  %v127_v43 = vrot.slane %v104_v35, 2 }
  0x1d   :  { %v89_v51 = vrot.slane %v312_v13, 1  ;;  %v154_v57 = vadd.f32 %v129_v44, %v105_v36  ;;  %v106_v59 = vadd.f32 %v84_v45, %v34_v12  ;;  %v107_v63 = vadd.f32 %v86_v46, %v65_v25 }
  0x1e   :  { %v124_v48 = vsel %vm121_vm2, %v122_v40, %v123_v41  ;;  %v126_v49 = vsel %vm121_vm2, %v123_v41, %v125_v42  ;;  %v128_v50 = vsel %vm121_vm2, %v125_v42, %v127_v43  ;;  %v130_v52 = vsel %vm121_vm2, %v127_v43, %v129_v44 }
  0x1f   :  { %v150_v53 = vadd.f32 %v124_v48, %v101_v32  ;;  %v151_v54 = vadd.f32 %v126_v49, %v102_v33  ;;  %v152_v55 = vadd.f32 %v128_v50, %v103_v34  ;;  %v153_v56 = vadd.f32 %v130_v52, %v104_v35 }
  0x20   :  { %v90_v58 = vsel %vm72_vm1, %v87_v39, %v89_v51  ;;  %v177_v1 = vrot.slane %v154_v57, 4  ;;  %v108_v2 = vadd.f32 %v88_v47, %v55_v24  ;;  %v110_v6 = vadd.f32 %v89_v51, %v312_v13 }
  0x21   :  { %v170_v60 = vrot.slane %v150_v53, 4  ;;  %v171_v61 = vrot.slane %v151_v54, 4  ;;  %v173_v62 = vrot.slane %v152_v55, 4  ;;  %v175_v0 = vrot.slane %v153_v56, 4 }
  0x22   :  { %v109_v3 = vadd.f32 %v90_v58, %v326_v26  ;;  %v131_v7 = vrot.slane %v106_v59, 2  ;;  %v132_v16 = vrot.slane %v107_v63, 2  ;;  %v134_v17 = vrot.slane %v108_v2, 2 }
  0x23   :  { %v172_v4 = vsel %vm49_vm0, %v170_v60, %v171_v61  ;;  %v174_v5 = vsel %vm49_vm0, %v171_v61, %v173_v62  ;;  %v176_v9 = vsel %vm49_vm0, %v173_v62, %v175_v0  ;;  %v178_v12 = vsel %vm49_vm0, %v175_v0, %v177_v1 }
  0x24   :  { %v196_v10 = vadd.f32 %v172_v4, %v150_v53  ;;  %v197_v11 = vadd.f32 %v174_v5, %v151_v54  ;;  %v198_v14 = vadd.f32 %v176_v9, %v152_v55  ;;  %v199_v15 = vadd.f32 %v178_v12, %v153_v56 }
  0x25   :  { %v136_v20 = vrot.slane %v109_v3, 2  ;;  %v138_v21 = vrot.slane %v110_v6, 2  ;;  %v133_v23 = vsel %vm121_vm2, %v131_v7, %v132_v16  ;;  %v135_v24 = vsel %vm121_vm2, %v132_v16, %v134_v17 }
  0x26   :  { %v204_v19 = vadd.f32 %v197_v11, %v196_v10  ;;  %v205_v22 = vadd.f32 %v198_v14, %v197_v11  ;;  %v155_v29 = vadd.f32 %v133_v23, %v106_v59  ;;  %v156_v31 = vadd.f32 %v135_v24, %v107_v63 }
  0x27   :  { %v137_v27 = vsel %vm121_vm2, %v134_v17, %v136_v20  ;;  %v139_v28 = vsel %vm121_vm2, %v136_v20, %v138_v21  ;;  %v159_v36 = vadd.f32 %v138_v21, %v110_v6 }
  0x28   :  { %v208_v25 = vadd.f32 %v204_v19, %v198_v14  ;;  %v209_v30 = vadd.f32 %v205_v22, %v199_v15  ;;  %v157_v32 = vadd.f32 %v137_v27, %v108_v2  ;;  %v158_v33 = vadd.f32 %v139_v28, %v109_v3 }
  0x29   :  { %v179_v35 = vrot.slane %v155_v29, 4  ;;  %v180_v38 = vrot.slane %v156_v31, 4  ;;  %v186_v42 = vrot.slane %v159_v36, 4 }
  0x2a   :  { %v212_v34 = vadd.f32 %v208_v25, %v318_v18  ;;  %v213_v37 = vadd.f32 %v209_v30, %v310_v8  ;;  %v182_v39 = vrot.slane %v157_v32, 4  ;;  %v184_v40 = vrot.slane %v158_v33, 4 }
  0x2b   :  { %v181_v44 = vsel %vm49_vm0, %v179_v35, %v180_v38 }
  0x2c   :  { %v216_v41 = vmul.f32 0.04, %v212_v34  ;;  %v217_v43 = vmul.f32 0.04, %v213_v37  ;;  %v183_v45 = vsel %vm49_vm0, %v180_v38, %v182_v39  ;;  %v185_v46 = vsel %vm49_vm0, %v182_v39, %v184_v40 }
  0x2d   :  { %v200_v18 = vadd.f32 %v181_v44, %v155_v29  ;;  %v201_v47 = vadd.f32 %v183_v45, %v156_v31  ;;  %v202_v48 = vadd.f32 %v185_v46, %v157_v32  ;;  %v187_v49 = vsel %vm49_vm0, %v184_v40, %v186_v42 }
  0x2e   :  { %221 = vst.msk [vmem:[#allocation5] sm:$0xff] %vm220_vm3, %v216_v41  ;;  %222 = vst.msk [vmem:[#allocation5 + $0x8] sm:$0xff] %vm220_vm3, %v217_v43  ;;  %v203_v8 = vadd.f32 %v187_v49, %v158_v33 }
  0x2f   :  { %v206_v50 = vadd.f32 %v201_v47, %v200_v18  ;;  %v207_v51 = vadd.f32 %v202_v48, %v201_v47 }
  0x31   :  { %v210_v52 = vadd.f32 %v206_v50, %v202_v48  ;;  %v211_v53 = vadd.f32 %v207_v51, %v203_v8 }
  0x33   :  { %v214_v54 = vadd.f32 %v210_v52, %v326_v26  ;;  %v215_v55 = vadd.f32 %v211_v53, %v312_v13 }
  0x35   :  { %v218_v56 = vmul.f32 0.04, %v214_v54  ;;  %v219_v57 = vmul.f32 0.04, %v215_v55 }
  0x37   :  { %223 = vst.msk [vmem:[#allocation5 + $0x10] sm:$0xff] %vm220_vm3, %v218_v56  ;;  %224 = vst.msk [vmem:[#allocation5 + $0x18] sm:$0xff] %vm220_vm3, %v219_v57 }
  0x38   :  { %277 = shalt.err (!%p274_p9)
}
  0x39   :  { %236 = dma.vmem_to_hbm [thread:$0]  %s231_s13, 512, %s373_s1, [#allocation4], %s291_s9, %s291_s9, %s292_s10  }
  0x3a   :  { %288 = dma.done.wait [#allocation4], 512  }
  0x3b   :  { %289 = vsyncadd [#allocation4], 4294966784 }
  0x3c   :  { %240 = vsyncpa [#allocation3], 1 }
  0x3d   :  { %241 = vsyncpa [#allocation4], 1 }

</bundles_post_ra>
